<compile_context>
chip_gen: v6e
topology: v6e:2x2x1
jax: 0.10.0
libtpu: 0.0.40
codegen_flags: <defaults>
</compile_context>

<pallas_src>
import math

import jax
import jax.numpy as jnp
from jax.experimental import pallas as pl
from jax.experimental.pallas import tpu as pltpu


# ---------------------------------------------------------------------------
# Kernels
# ---------------------------------------------------------------------------

def ffn_resident_kernel(x_ref, w1_ref, b1_ref, w2_ref, b2_ref, o_ref):
    """Weight-resident fast path.

    The full (padded) W1/W2 live in VMEM with constant index maps, so Pallas
    fetches them from HBM exactly once; the grid only iterates over row tiles.
    x is cast to the MXU compute dtype inside the kernel (no wrapper pass).
    """
    xb = x_ref[...].astype(w1_ref.dtype)
    h = jnp.dot(xb, w1_ref[...], preferred_element_type=jnp.float32)
    h = jnp.maximum(h + b1_ref[...], 0.0)                 # bias + ReLU
    # dropout (eval mode) == identity
    out = jnp.dot(h.astype(w2_ref.dtype), w2_ref[...],
                  preferred_element_type=jnp.float32)
    o_ref[...] = (out + b2_ref[...]).astype(o_ref.dtype)


def ffn_streaming_kernel(x_ref, w1_ref, b1_ref, w2_ref, b2_ref, o_ref, acc_ref):
    """Streaming path: d_ff tiled on a trailing "arbitrary" axis with an f32
    VMEM accumulator resident across it (pl.when init / finalize)."""
    k = pl.program_id(1)

    @pl.when(k == 0)
    def _():
        acc_ref[...] = jnp.zeros_like(acc_ref)

    xb = x_ref[...].astype(w1_ref.dtype)
    h = jnp.dot(xb, w1_ref[...], preferred_element_type=jnp.float32)
    h = jnp.maximum(h + b1_ref[...], 0.0)                 # bias + ReLU
    # dropout (eval mode) == identity
    acc_ref[...] += jnp.dot(h.astype(w2_ref.dtype), w2_ref[...],
                            preferred_element_type=jnp.float32)

    @pl.when(k == pl.num_programs(1) - 1)
    def _():
        o_ref[...] = (acc_ref[...] + b2_ref[...]).astype(o_ref.dtype)


# ---------------------------------------------------------------------------
# Tiling / budget helpers
# ---------------------------------------------------------------------------

def _round_up(x, m):
    return -(-x // m) * m


def _vmem_budget():
    """~85% of this generation's physical VMEM (v5e/v6e 128 MiB, v7x 64 MiB)."""
    try:
        cap = pltpu.get_tpu_info().vmem_capacity_bytes
    except Exception:
        cap = 64 << 20   # conservative (v7x-sized) fallback
    return int(0.85 * cap)


def _plan_tiles(n, dp, d_ff, budget, x_itm, out_itm, w_itm):
    """Pick (mode, tm, tf, d_ff_padded) under a VMEM budget.

    mode == "resident": weights fully VMEM-resident, 1-D row grid (tf is None).
    mode == "streaming": d_ff tiled by tf on a trailing reduction axis.
    """
    n16 = max(16, _round_up(n, 16))   # bf16 packs 2 rows/sublane

    def resident_vmem(tm, dffp):
        blocks = 2 * (tm * dp * x_itm          # x rows (double-buffered)
                      + dp * dffp * w_itm      # W1
                      + dffp * dp * w_itm      # W2
                      + dffp * 4 + dp * 4      # biases (f32)
                      + tm * dp * out_itm)     # output rows
        inter = (tm * dp * w_itm               # x cast to bf16
                 + tm * dffp * (4 + w_itm)     # hidden f32 + bf16 cast
                 + tm * dp * 4)                # out pre-cast f32
        return blocks + inter

    def streaming_vmem(tm, tf, dffp):
        blocks = 2 * (tm * dp * x_itm
                      + dp * tf * w_itm
                      + tf * dp * w_itm
                      + tf * 4 + dp * 4
                      + tm * dp * out_itm)
        inter = tm * dp * w_itm + tm * tf * (4 + w_itm) + tm * dp * 4
        acc = tm * dp * 4
        return blocks + inter + acc

    # --- Weight-resident fast path: weights read from HBM exactly once. ---
    dffp_res = _round_up(d_ff, 128)
    for tm in (512, 384, 256, 128, 64, 32, 16):
        tm_eff = min(tm, n16)
        if resident_vmem(tm_eff, dffp_res) <= budget:
            return "resident", tm_eff, None, dffp_res

    # --- Streaming path: prefer the largest row tile first (arithmetic
    # intensity on the weight stream ~ tm flop/byte), then the largest
    # MXU-aligned d_ff tile that still fits (256-multiples before 128). ---
    for tm in (1024, 768, 512, 384, 256, 128, 64, 32, 16):
        tm_eff = min(tm, n16)
        for tf in (2048, 1024, 512, 256, 128):
            tf_eff = min(tf, _round_up(d_ff, 128))
            dffp = _round_up(d_ff, tf_eff)
            if streaming_vmem(tm_eff, tf_eff, dffp) <= budget:
                return "streaming", tm_eff, tf_eff, dffp

    # Last resort: minimal tiles even if the estimate is over budget.
    tf_eff = min(128, _round_up(d_ff, 128))
    return "streaming", min(16, n16), tf_eff, _round_up(d_ff, tf_eff)


# ---------------------------------------------------------------------------
# Wrapper
# ---------------------------------------------------------------------------

def feed_forward(x, w1, b1, w2, b2, *, compute_dtype=jnp.bfloat16,
                 vmem_budget=None):
    """FeedForward forward pass.  x: (batch, seq, d_model) -> same shape.

    w1: (d_model, d_ff), w2: (d_ff, d_model) are stored (in, out) so the
    kernel computes x @ W directly (== x @ weight.T for PyTorch's (out, in)
    layout).  Pass w1/w2 already cast to `compute_dtype` (bf16) to avoid a
    per-call cast pass over HBM; the wrapper only casts if needed.
    """
    batch, seq, d_model = x.shape
    d_ff = w1.shape[1]
    n = batch * seq

    hw_budget = _vmem_budget()
    plan_budget = hw_budget if vmem_budget is None else vmem_budget

    w_itm = jnp.dtype(compute_dtype).itemsize
    x_itm = jnp.dtype(x.dtype).itemsize
    out_itm = x_itm

    # Lane-dense output: pad d_model to a multiple of 128 (sub-128 last dims
    # lower to masked vst.msk partial stores, ~4.5x writeback overhead).
    dp = _round_up(d_model, 128)

    mode, tm_eff, tf_eff, dffp = _plan_tiles(
        n, dp, d_ff, plan_budget, x_itm, out_itm, w_itm)

    # Cast weights only if the caller did not already store them in bf16.
    w1c = w1 if w1.dtype == compute_dtype else w1.astype(compute_dtype)
    w2c = w2 if w2.dtype == compute_dtype else w2.astype(compute_dtype)
    b1f = b1.astype(jnp.float32)
    b2f = b2.astype(jnp.float32)

    x2d = x.reshape(n, d_model)
    if dp != d_model:
        x2d = jnp.pad(x2d, ((0, 0), (0, dp - d_model)))
        w1c = jnp.pad(w1c, ((0, dp - d_model), (0, 0)))
        w2c = jnp.pad(w2c, ((0, 0), (0, dp - d_model)))
        b2f = jnp.pad(b2f, (0, dp - d_model))
    if dffp != d_ff:
        # Zero-padded W1 columns with zero b1 entries give ReLU(0)=0 hidden
        # columns feeding zero-padded W2 rows -> numerically inert.
        w1c = jnp.pad(w1c, ((0, 0), (0, dffp - d_ff)))
        b1f = jnp.pad(b1f, (0, dffp - d_ff))
        w2c = jnp.pad(w2c, ((0, dffp - d_ff), (0, 0)))
    b1_2d = b1f.reshape(1, dffp)
    b2_2d = b2f.reshape(1, dp)

    n_row_tiles = int(pl.cdiv(n, tm_eff))
    flops = 4 * n * dp * dffp  # two matmuls, 2 flops/MAC each

    # Never request more than ~85% of physical VMEM (v7x only has 64 MiB),
    # never less than a safe compile floor.
    vmem_limit = int(min(hw_budget, max(plan_budget, 32 << 20)))

    if mode == "resident":
        bytes_accessed = (n * dp * x_itm
                          + 2 * dp * dffp * w_itm       # W1 + W2, fetched once
                          + (dffp + dp) * 4             # biases
                          + n * dp * out_itm)           # output
        out2d = pl.pallas_call(
            ffn_resident_kernel,
            out_shape=jax.ShapeDtypeStruct((n, dp), x.dtype),
            grid_spec=pltpu.PrefetchScalarGridSpec(
                num_scalar_prefetch=0,
                grid=(n_row_tiles,),
                in_specs=[
                    pl.BlockSpec((tm_eff, dp), lambda i: (i, 0)),   # x rows
                    pl.BlockSpec((dp, dffp), lambda i: (0, 0)),     # W1 resident
                    pl.BlockSpec((1, dffp), lambda i: (0, 0)),      # b1
                    pl.BlockSpec((dffp, dp), lambda i: (0, 0)),     # W2 resident
                    pl.BlockSpec((1, dp), lambda i: (0, 0)),        # b2
                ],
                out_specs=pl.BlockSpec((tm_eff, dp), lambda i: (i, 0)),
            ),
            compiler_params=pltpu.CompilerParams(
                dimension_semantics=("parallel",),
                vmem_limit_bytes=vmem_limit,
            ),
            cost_estimate=pl.CostEstimate(
                flops=flops, transcendentals=0, bytes_accessed=bytes_accessed),
        )(x2d, w1c, b1_2d, w2c, b2_2d)
    else:
        # Honest estimate: weights are re-streamed once per row tile.
        bytes_accessed = (n * dp * x_itm
                          + n_row_tiles * (2 * dp * dffp * w_itm + dffp * 4)
                          + dp * 4
                          + n * dp * out_itm)
        grid = (n_row_tiles, dffp // tf_eff)
        # TODO(synk): if profiling shows exposed weight-DMA latency here, add
        # pipeline_mode=pl.Buffered(3) to the W1/W2 BlockSpecs only.
        out2d = pl.pallas_call(
            ffn_streaming_kernel,
            out_shape=jax.ShapeDtypeStruct((n, dp), x.dtype),
            grid_spec=pltpu.PrefetchScalarGridSpec(
                num_scalar_prefetch=0,
                grid=grid,
                in_specs=[
                    pl.BlockSpec((tm_eff, dp), lambda i, k: (i, 0)),   # x rows
                    pl.BlockSpec((dp, tf_eff), lambda i, k: (0, k)),   # W1 chunk
                    pl.BlockSpec((1, tf_eff), lambda i, k: (0, k)),    # b1 chunk
                    pl.BlockSpec((tf_eff, dp), lambda i, k: (k, 0)),   # W2 chunk
                    pl.BlockSpec((1, dp), lambda i, k: (0, 0)),        # b2
                ],
                out_specs=pl.BlockSpec((tm_eff, dp), lambda i, k: (i, 0)),
                scratch_shapes=[pltpu.VMEM((tm_eff, dp), jnp.float32)],
            ),
            compiler_params=pltpu.CompilerParams(
                dimension_semantics=("parallel", "arbitrary"),
                vmem_limit_bytes=vmem_limit,
            ),
            cost_estimate=pl.CostEstimate(
                flops=flops, transcendentals=0, bytes_accessed=bytes_accessed),
        )(x2d, w1c, b1_2d, w2c, b2_2d)

    if dp != d_model:
        out2d = out2d[:, :d_model]
    return out2d.reshape(batch, seq, d_model)


# ---------------------------------------------------------------------------
# Param init mirroring nn.Linear
# ---------------------------------------------------------------------------

def init_params(key, d_model, d_ff, dtype=jnp.float32):
    """Deterministic init mirroring nn.Linear's uniform(-1/sqrt(fan_in), ...)."""
    k1, k2, k3, k4 = jax.random.split(key, 4)
    bound1 = 1.0 / math.sqrt(d_model)
    bound2 = 1.0 / math.sqrt(d_ff)
    # Stored as (in, out) so the kernel computes x @ W directly
    # (equivalent to PyTorch's x @ weight.T with weight of shape (out, in)).
    w1 = jax.random.uniform(k1, (d_model, d_ff), dtype, -bound1, bound1)
    b1 = jax.random.uniform(k2, (d_ff,), dtype, -bound1, bound1)
    w2 = jax.random.uniform(k3, (d_ff, d_model), dtype, -bound2, bound2)
    b2 = jax.random.uniform(k4, (d_model,), dtype, -bound2, bound2)
    return w1, b1, w2, b2


if __name__ == "__main__":
    key = jax.random.PRNGKey(0)

    # --- Test 1: small FeedForward (exercises the weight-resident path) ---
    batch, seq, d_model, d_ff = 2, 8, 32, 64
    kx, kp = jax.random.split(key)
    x = jax.random.normal(kx, (batch, seq, d_model), jnp.float32)
    w1, b1, w2, b2 = init_params(kp, d_model, d_ff)

    # Cast weights to the MXU compute dtype once, outside the call.
    w1_bf = w1.astype(jnp.bfloat16)
    w2_bf = w2.astype(jnp.bfloat16)

    out = feed_forward(x, w1_bf, b1, w2_bf, b2)
    out = jax.block_until_ready(out)
    assert out.shape == (batch, seq, d_model)

    # Reference mirroring the kernel's mixed precision (bf16 inputs, f32 accum).
    xb = x.reshape(-1, d_model).astype(jnp.bfloat16)
    h = jnp.dot(xb, w1_bf, preferred_element_type=jnp.float32) + b1
    h = jnp.maximum(h, 0.0).astype(jnp.bfloat16)
    ref = jnp.dot(h, w2_bf, preferred_element_type=jnp.float32) + b2
    ref = ref.reshape(batch, seq, d_model).astype(out.dtype)
    assert jnp.allclose(out, ref, atol=2e-2, rtol=2e-2)

    # Sanity check against plain f32 math with a bf16-appropriate tolerance.
    ref32 = jnp.maximum(x @ w1 + b1, 0.0) @ w2 + b2
    assert jnp.allclose(out, ref32, atol=5e-2, rtol=5e-2)

    # --- Test 2: force the streaming (d_ff-tiled) path with a tiny planning
    # budget, so the accumulator / pl.when init-finalize path is exercised ---
    d_model2, d_ff2 = 128, 512
    x2 = jax.random.normal(jax.random.PRNGKey(1), (2, 16, d_model2), jnp.float32)
    w1b, b1b, w2b, b2b = init_params(jax.random.PRNGKey(2), d_model2, d_ff2)
    w1b_bf, w2b_bf = w1b.astype(jnp.bfloat16), w2b.astype(jnp.bfloat16)

    out2 = feed_forward(x2, w1b_bf, b1b, w2b_bf, b2b, vmem_budget=400_000)
    out2 = jax.block_until_ready(out2)
    assert out2.shape == x2.shape

    x2b = x2.reshape(-1, d_model2).astype(jnp.bfloat16)
    h2 = jnp.dot(x2b, w1b_bf, preferred_element_type=jnp.float32) + b1b
    h2 = jnp.maximum(h2, 0.0).astype(jnp.bfloat16)
    ref2 = jnp.dot(h2, w2b_bf, preferred_element_type=jnp.float32) + b2b
    ref2 = ref2.reshape(2, 16, d_model2).astype(out2.dtype)
    assert jnp.allclose(out2, ref2, atol=2e-2, rtol=2e-2)

    print("KERNEL_OK")
</pallas_src>

<mosaic_0001>
module attributes {stable_mosaic.version = 11 : i64} {
  func.func @ffn_resident_kernel(%arg0: i32, %arg1: memref<16x128xf32, #tpu.memory_space<vmem>>, %arg2: memref<128x128xbf16, #tpu.memory_space<vmem>>, %arg3: memref<1x128xf32, #tpu.memory_space<vmem>>, %arg4: memref<128x128xbf16, #tpu.memory_space<vmem>>, %arg5: memref<1x128xf32, #tpu.memory_space<vmem>>, %arg6: memref<16x128xf32, #tpu.memory_space<vmem>>) attributes {dimension_semantics = [#tpu.dimension_semantics<parallel>], iteration_bounds = array<i64: 1>, scalar_prefetch = 0 : i64, scratch_operands = 0 : i64, tpu.core_type = #tpu.core_type<tc>, window_params = [{transform_indices = @transform_0, window_bounds = array<i64: 16, 128>}, {pipeline_mode = #tpu.pipeline_mode<synchronous>, transform_indices = @transform_1, window_bounds = array<i64: 128, 128>}, {pipeline_mode = #tpu.pipeline_mode<synchronous>, transform_indices = @transform_2, window_bounds = array<i64: 1, 128>}, {pipeline_mode = #tpu.pipeline_mode<synchronous>, transform_indices = @transform_3, window_bounds = array<i64: 128, 128>}, {pipeline_mode = #tpu.pipeline_mode<synchronous>, transform_indices = @transform_4, window_bounds = array<i64: 1, 128>}, {transform_indices = @transform_5, window_bounds = array<i64: 16, 128>}]} {
    %c0 = arith.constant 0 : index
    %c0_0 = arith.constant 0 : index
    %0 = vector.load %arg1[%c0, %c0_0] : memref<16x128xf32, #tpu.memory_space<vmem>>, vector<16x128xf32>
    %1 = arith.truncf %0 : vector<16x128xf32> to vector<16x128xbf16>
    %c0_1 = arith.constant 0 : index
    %c0_2 = arith.constant 0 : index
    %2 = vector.load %arg2[%c0_1, %c0_2] : memref<128x128xbf16, #tpu.memory_space<vmem>>, vector<128x128xbf16>
    %cst = arith.constant dense<0.000000e+00> : vector<16x128xf32>
    %3 = tpu.matmul %1, %2, %cst {dimension_numbers = #tpu.dot_dimension_numbers<[1], [0], [0], [1], [0, 0, 1, 1], [], []>} : vector<16x128xbf16>, vector<128x128xbf16>, vector<16x128xf32> -> vector<16x128xf32>
    %c0_3 = arith.constant 0 : index
    %c0_4 = arith.constant 0 : index
    %4 = vector.load %arg3[%c0_3, %c0_4] : memref<1x128xf32, #tpu.memory_space<vmem>>, vector<1x128xf32>
    %5 = vector.broadcast %4 : vector<1x128xf32> to vector<16x128xf32>
    %6 = arith.addf %3, %5 : vector<16x128xf32>
    %cst_5 = arith.constant 0.000000e+00 : f32
    %7 = vector.broadcast %cst_5 : f32 to vector<16x128xf32>
    %8 = arith.maximumf %6, %7 : vector<16x128xf32>
    %9 = arith.truncf %8 : vector<16x128xf32> to vector<16x128xbf16>
    %c0_6 = arith.constant 0 : index
    %c0_7 = arith.constant 0 : index
    %10 = vector.load %arg4[%c0_6, %c0_7] : memref<128x128xbf16, #tpu.memory_space<vmem>>, vector<128x128xbf16>
    %cst_8 = arith.constant dense<0.000000e+00> : vector<16x128xf32>
    %11 = tpu.matmul %9, %10, %cst_8 {dimension_numbers = #tpu.dot_dimension_numbers<[1], [0], [0], [1], [0, 0, 1, 1], [], []>} : vector<16x128xbf16>, vector<128x128xbf16>, vector<16x128xf32> -> vector<16x128xf32>
    %c0_9 = arith.constant 0 : index
    %c0_10 = arith.constant 0 : index
    %12 = vector.load %arg5[%c0_9, %c0_10] : memref<1x128xf32, #tpu.memory_space<vmem>>, vector<1x128xf32>
    %13 = vector.broadcast %12 : vector<1x128xf32> to vector<16x128xf32>
    %14 = arith.addf %11, %13 : vector<16x128xf32>
    %c0_11 = arith.constant 0 : index
    %c0_12 = arith.constant 0 : index
    %15 = vector.load %arg6[%c0_11, %c0_12] : memref<16x128xf32, #tpu.memory_space<vmem>>, vector<16x128xf32>
    tpu.vector_store %arg6[%c0_11, %c0_12], %14 {strides = array<i32>} : memref<16x128xf32, #tpu.memory_space<vmem>>, vector<16x128xf32>,
    return
  }
  func.func @transform_0(%arg0: i32) -> (i32, i32) {
    %c0_i32 = arith.constant 0 : i32
    %c0_i32_0 = arith.constant 0 : i32
    return %arg0, %c0_i32 : i32, i32
  }
  func.func @transform_1(%arg0: i32) -> (i32, i32) {
    %c0_i32 = arith.constant 0 : i32
    %c0_i32_0 = arith.constant 0 : i32
    %c0_i32_1 = arith.constant 0 : i32
    return %c0_i32, %c0_i32_0 : i32, i32
  }
  func.func @transform_2(%arg0: i32) -> (i32, i32) {
    %c0_i32 = arith.constant 0 : i32
    %c0_i32_0 = arith.constant 0 : i32
    %c0_i32_1 = arith.constant 0 : i32
    return %c0_i32, %c0_i32_0 : i32, i32
  }
  func.func @transform_3(%arg0: i32) -> (i32, i32) {
    %c0_i32 = arith.constant 0 : i32
    %c0_i32_0 = arith.constant 0 : i32
    %c0_i32_1 = arith.constant 0 : i32
    return %c0_i32, %c0_i32_0 : i32, i32
  }
  func.func @transform_4(%arg0: i32) -> (i32, i32) {
    %c0_i32 = arith.constant 0 : i32
    %c0_i32_0 = arith.constant 0 : i32
    %c0_i32_1 = arith.constant 0 : i32
    return %c0_i32, %c0_i32_0 : i32, i32
  }
  func.func @transform_5(%arg0: i32) -> (i32, i32) {
    %c0_i32 = arith.constant 0 : i32
    %c0_i32_0 = arith.constant 0 : i32
    return %arg0, %c0_i32 : i32, i32
  }
}

</mosaic_0001>

<bundles_post_ra>
// kernel: tpu_custom_call.1
= control target key start
LH: loop header
LB: loop body
LE: loop exit
PB: predicated region body
PF: predicated region fallthrough
CT: control target
= control target key end

     0   :  { %10 = vsyncpa [#allocation3], 0  ;;  %s565_s0 = inlined_call_operand.hbm [shape: f32[16,128], index: 0, kind: input, shape index: {}]   ;;  %s566_s1 = inlined_call_operand.hbm [shape: bf16[128,128], index: 1, kind: input, shape index: {}]   ;;  %s567_s2 = inlined_call_operand.vmem [shape: f32[1,128], index: 2, kind: input, shape index: {}]   ;;  %s568_s3 = inlined_call_operand.hbm [shape: bf16[128,128], index: 3, kind: input, shape index: {}]   ;;  %s569_s4 = inlined_call_operand.vmem [shape: f32[1,128], index: 4, kind: input, shape index: {}]   ;;  %s570_s5 = inlined_call_operand.hbm [shape: f32[16,128], index: 5, kind: output, shape index: {}]  }
   0x1   :  { %11 = vsyncpa [#allocation6], 0 }
   0x2   :  { %12 = vsyncpa [#allocation4], 0  ;;  %s501_s18 = smov [#allocation5]  }
   0x3   :  { %s30_s19 = sshll.u32 %s501_s18, 4  ;;  %s31_s19 = int_to_ptr.vmem [resolvable:$true] %s30_s19 }
   0x4   :  { %s423_s20 = scalar_lea.vmem %s31_s19, 1024  ;;  %p428_p1 = scmp.lt.s32.totalorder %s31_s19, %s31_s19 }
   0x5   :  { %p424_p0 = scmp.ne.s32.totalorder %s31_s19, %s423_s20  ;;  %p429_p2 = scmp.lt.s32.totalorder %s423_s20, %s423_s20 }
   0x7   :  { %p430_p3 = por %p429_p2, %p428_p1 }
   0x9   :  { %p431_p4 = pnand %p430_p3, %p424_p0 }
   0xb   :  { %434 = shalt.err (!%p431_p4)
}
   0xc   :  { %s502_s21 = smov 64   ;;  %s503_s22 = smov 4  }
   0xd   :  { %36 = dma.hbm_to_vmem [thread:$0]  %s566_s1, 1024, %s31_s19, [#allocation6], %s502_s21, %s502_s21, %s503_s22  }
   0xe   :  { %s504_s25 = smov [#allocation2]  }
   0xf   :  { %s18_s26 = sshll.u32 %s504_s25, 4  ;;  %s19_s26 = int_to_ptr.vmem [resolvable:$true] %s18_s26 }
  0x10   :  { %s443_s27 = scalar_lea.vmem %s19_s26, 256  ;;  %p448_p6 = scmp.lt.s32.totalorder %s19_s26, %s19_s26 }
  0x11   :  { %p444_p5 = scmp.ne.s32.totalorder %s19_s26, %s443_s27  ;;  %p449_p7 = scmp.lt.s32.totalorder %s443_s27, %s443_s27 }
  0x13   :  { %p450_p8 = por %p449_p7, %p448_p6 }
  0x15   :  { %p451_p9 = pnand %p450_p8, %p444_p5 }
  0x17   :  { %454 = shalt.err (!%p451_p9)
}
  0x18   :  { %s505_s28 = smov 128   ;;  %s506_s29 = smov 8  }
  0x19   :  { %24 = dma.hbm_to_vmem [thread:$0]  %s565_s0, 256, %s19_s26, [#allocation3], %s505_s28, %s505_s28, %s506_s29  }
  0x1a   :  { %s507_s1 = smov [#allocation7]  }
  0x1b   :  { %s44_s7 = sshll.u32 %s507_s1, 4  ;;  %s45_s7 = int_to_ptr.vmem [resolvable:$true] %s44_s7 }
  0x1c   :  { %s463_s8 = scalar_lea.vmem %s45_s7, 1024  ;;  %p468_p11 = scmp.lt.s32.totalorder %s45_s7, %s45_s7 }
  0x1d   :  { %p464_p10 = scmp.ne.s32.totalorder %s45_s7, %s463_s8  ;;  %p469_p12 = scmp.lt.s32.totalorder %s463_s8, %s463_s8 }
  0x1f   :  { %p470_p13 = por %p469_p12, %p468_p11 }
  0x21   :  { %p471_p0 = pnand %p470_p13, %p464_p10 }
  0x23   :  { %474 = shalt.err (!%p471_p0)
}
  0x24   :  { %50 = dma.hbm_to_vmem [thread:$0]  %s568_s3, 1024, %s45_s7, [#allocation6], %s502_s21, %s502_s21, %s503_s22  }
  0x25   :  { %495 = dma.done.wait [#allocation3], 256  }
  0x26   :  { %496 = vsyncadd [#allocation3], 4294967040 }
  0x27   :  { %497 = dma.done.wait [#allocation6], 2048  }
  0x28   :  { %498 = vsyncadd [#allocation6], 4294965248  ;;  %v508_v0 = vmov 0.0   ;;  %vm509_vm0 = vmmov 0   ;;  %v399_v1 = vld [vmem:[#allocation5 + $0x38] sm:$0xff]   ;;  %v400_v2 = vld [vmem:[#allocation5 + $0x30] sm:$0xff]  }
  0x29   :  { %349 = vmatprep.subr.bf16.mxu0 %v508_v0  ;;  %365 = vmatprep.mubr.msk.bf16.mxu0 %vm509_vm0, %v508_v0  ;;  %v401_v3 = vld [vmem:[#allocation5 + $0x28] sm:$0xff]   ;;  %v407_v4 = vld [vmem:[#allocation7 + $0x38] sm:$0xff]   ;;  %v402_v5 = vld [vmem:[#allocation5 + $0x20] sm:$0xff]   ;;  %s510_s13 = smov [#allocation8]  }
  0x2a   :  { %369 = vmatprep.subr.bf16.mxu1 %v508_v0  ;;  %385 = vmatprep.mubr.msk.bf16.mxu1 %vm509_vm0, %v508_v0  ;;  %v408_v6 = vld [vmem:[#allocation7 + $0x30] sm:$0xff]   ;;  %v403_v7 = vld [vmem:[#allocation5 + $0x18] sm:$0xff]   ;;  %v409_v8 = vld [vmem:[#allocation7 + $0x28] sm:$0xff]   ;;  %s300_s14 = sshll.u32 %s510_s13, 4  ;;  %s301_s14 = int_to_ptr.vmem [resolvable:$true] %s300_s14 }
  0x2b   :  { %350 = vmatpush3.bf16.msra.mxu0 %v399_v1  ;;  %370 = vmatpush3.bf16.msra.mxu1 %v407_v4  ;;  %v404_v9 = vld [vmem:[#allocation5 + $0x10] sm:$0xff]   ;;  %v410_v10 = vld [vmem:[#allocation7 + $0x20] sm:$0xff]   ;;  %v405_v11 = vld [vmem:[#allocation5 + $0x8] sm:$0xff]   ;;  %p480_p2 = scmp.lt.s32.totalorder %s301_s14, %s301_s14 }
  0x2c   :  { %351 = vmatprep.subr.bf16.mxu0 %v508_v0  ;;  %371 = vmatprep.subr.bf16.mxu1 %v508_v0  ;;  %v411_v12 = vld [vmem:[#allocation7 + $0x18] sm:$0xff]   ;;  %v406_v13 = vld [vmem:[#allocation5] sm:$0xff]   ;;  %v63_v14 = vld [vmem:[#allocation2] sm:$0xff] }
  0x2d   :  { %v64_v15 = vld [vmem:[#allocation2 + $0x8] sm:$0xff]  ;;  %v412_v17 = vld [vmem:[#allocation7 + $0x10] sm:$0xff]   ;;  %v413_v18 = vld [vmem:[#allocation7 + $0x8] sm:$0xff]  }
  0x2e   :  { %v65_v16 = vpack.c.bf16 %v64_v15, %v63_v14  ;;  %v414_v19 = vld [vmem:[#allocation7] sm:$0xff]   ;;  %v313_v20 = vld [vmem:[%s567_s2] ss:$0 sm:$0xff]  ;;  %s475_s2 = scalar_lea.vmem %s301_s14, 256 }
  0x2f   :  { %352 = vmatpush3.bf16.msra.mxu0 %v400_v2  ;;  %372 = vmatpush3.bf16.msra.mxu1 %v408_v6  ;;  %v322_v30 = vld [vmem:[%s569_s4] ss:$0 sm:$0xff]  ;;  %p476_p1 = scmp.ne.s32.totalorder %s301_s14, %s475_s2  ;;  %p481_p3 = scmp.lt.s32.totalorder %s475_s2, %s475_s2 }
  0x30   :  { %353 = vmatprep.subr.bf16.mxu0 %v508_v0  ;;  %373 = vmatprep.subr.bf16.mxu1 %v508_v0 }
  0x31   :  { %p482_p4 = por %p481_p3, %p480_p2 }
  0x33   :  { %354 = vmatpush3.bf16.msra.mxu0 %v401_v3  ;;  %374 = vmatpush3.bf16.msra.mxu1 %v409_v8  ;;  %p483_p5 = pnand %p482_p4, %p476_p1 }
  0x34   :  { %355 = vmatprep.subr.bf16.mxu0 %v508_v0  ;;  %375 = vmatprep.subr.bf16.mxu1 %v508_v0 }
  0x37   :  { %356 = vmatpush3.bf16.msra.mxu0 %v402_v5  ;;  %376 = vmatpush3.bf16.msra.mxu1 %v410_v10 }
  0x38   :  { %357 = vmatprep.subr.bf16.mxu0 %v508_v0  ;;  %377 = vmatprep.subr.bf16.mxu1 %v508_v0 }
  0x3b   :  { %358 = vmatpush3.bf16.msra.mxu0 %v403_v7  ;;  %378 = vmatpush3.bf16.msra.mxu1 %v411_v12 }
  0x3c   :  { %359 = vmatprep.subr.bf16.mxu0 %v508_v0  ;;  %379 = vmatprep.subr.bf16.mxu1 %v508_v0 }
  0x3f   :  { %360 = vmatpush3.bf16.msra.mxu0 %v404_v9  ;;  %380 = vmatpush3.bf16.msra.mxu1 %v412_v17 }
  0x40   :  { %361 = vmatprep.subr.bf16.mxu0 %v508_v0  ;;  %381 = vmatprep.subr.bf16.mxu1 %v508_v0 }
  0x43   :  { %362 = vmatpush3.bf16.msra.mxu0 %v405_v11  ;;  %382 = vmatpush3.bf16.msra.mxu1 %v413_v18 }
  0x44   :  { %363 = vmatprep.subr.bf16.mxu0 %v508_v0  ;;  %383 = vmatprep.subr.bf16.mxu1 %v508_v0 }
  0x47   :  { %364 = vmatpush3.bf16.msra.mxu0 %v406_v13  ;;  %384 = vmatpush3.bf16.msra.mxu1 %v414_v19 }
  0x4a   :  { %366 = vmatmul.mubr.bf16.vlgmr.msra.gmra.mxu0 %v65_v16 }
 0x10a   :  { %v171_v21 = vpop.f32.mrf.mxu0 }
 0x10b   :  { %v172_v23 = vadd.f32 %v313_v20, %v171_v21 }
 0x10c   :  { %v367_v22 = vpop.f32.mrf.mxu0 }
 0x10d   :  { %v178_v27 = vmax.f32 %v172_v23, 0.0 }
 0x10e   :  { %v174_v24 = vpop.f32.mrf.mxu0 }
 0x10f   :  { %v175_v25 = vadd.f32 %v313_v20, %v174_v24 }
 0x110   :  { %v368_v26 = vpop.f32.mrf.mxu0 }
 0x111   :  { %v179_v28 = vmax.f32 %v175_v25, 0.0 }
 0x113   :  { %v180_v29 = vpack.c.bf16 %v179_v28, %v178_v27 }
 0x115   :  { %386 = vmatmul.mubr.bf16.vlgmr.msra.gmra.mxu1 %v180_v29 }
 0x1d5   :  { %v286_v31 = vpop.f32.mrf.mxu1 }
 0x1d6   :  { %v287_v32 = vadd.f32 %v322_v30, %v286_v31 }
 0x1d7   :  { %v387_v33 = vpop.f32.mrf.mxu1 }
 0x1d8   :  { %293 = vst [vmem:[#allocation8] sm:$0xff] %v287_v32 }
 0x1d9   :  { %v289_v34 = vpop.f32.mrf.mxu1 }
 0x1da   :  { %v290_v35 = vadd.f32 %v322_v30, %v289_v34 }
 0x1db   :  { %v388_v36 = vpop.f32.mrf.mxu1 }
 0x1dc   :  { %294 = vst [vmem:[#allocation8 + $0x8] sm:$0xff] %v290_v35 }
 0x1dd   :  { %486 = shalt.err (!%p483_p5)
}
 0x1de   :  { %306 = dma.vmem_to_hbm [thread:$0]  %s301_s14, 256, %s570_s5, [#allocation4], %s505_s28, %s505_s28, %s506_s29  }
 0x1df   :  { %499 = dma.done.wait [#allocation4], 256  }
 0x1e0   :  { %500 = vsyncadd [#allocation4], 4294967040 }
 0x1e1   :  { %310 = vsyncpa [#allocation3], 1 }
 0x1e2   :  { %311 = vsyncpa [#allocation6], 1 }
 0x1e3   :  { %312 = vsyncpa [#allocation4], 1 }

</bundles_post_ra>
